<compile_context>
chip_gen: v7x
topology: tpu7x:2x2x1
jax: 0.10.0
libtpu: 0.0.40
codegen_flags: <defaults>
</compile_context>

<pallas_src>
import math
from functools import partial

import jax
import jax.numpy as jnp
from jax import lax
from jax.experimental import pallas as pl
from jax.experimental.pallas import tpu as pltpu


def _round_up(x, m):
    return ((x + m - 1) // m) * m


# ---------------------------------------------------------------------------
# Path 1: small vocabulary -> VMEM-resident table, one-hot MXU gather
# ---------------------------------------------------------------------------
def _emb_onehot_kernel(ids_ref, emb_ref, o_ref, *, scale):
    ids = ids_ref[...]                                   # (tt, 1) int32
    tt = ids.shape[0]
    vocab = emb_ref.shape[0]
    onehot = (ids == lax.broadcasted_iota(jnp.int32, (tt, vocab), 1))
    out = jnp.dot(onehot.astype(emb_ref.dtype), emb_ref[...],
                  preferred_element_type=jnp.float32)
    o_ref[...] = (out * scale).astype(o_ref.dtype)


def _embedding_onehot(ids_flat, emb_table, scale, *, tile_tokens=256):
    (total,) = ids_flat.shape
    vocab, d_model = emb_table.shape
    tt = min(_round_up(tile_tokens, 8), _round_up(total, 8))
    num_tiles = pl.cdiv(total, tt)
    padded = num_tiles * tt
    if padded != total:
        ids_flat = jnp.concatenate(
            [ids_flat, jnp.zeros((padded - total,), jnp.int32)])
    ids2d = ids_flat.reshape(padded, 1)

    return pl.pallas_call(
        partial(_emb_onehot_kernel, scale=scale),
        out_shape=jax.ShapeDtypeStruct((total, d_model), emb_table.dtype),
        grid=(num_tiles,),
        in_specs=[pl.BlockSpec((tt, 1), lambda i: (i, 0)),
                  pl.BlockSpec((vocab, d_model), lambda i: (0, 0))],
        out_specs=pl.BlockSpec((tt, d_model), lambda i: (i, 0)),
        compiler_params=pltpu.CompilerParams(
            dimension_semantics=("parallel",)),
    )(ids2d, emb_table)


# ---------------------------------------------------------------------------
# Path 2: general case -> manual HBM gather, chunked multi-slot DMA window
# ---------------------------------------------------------------------------
def _emb_gather_kernel(ids_ref, emb_hbm, o_ref, sems, *,
                       chunk, n_chunks, n_slots, scale, ids_are_blocked):
    """One grid step: gather n_chunks*chunk embedding rows straight into the
    output tile with an n_slots-deep chunked DMA window, scaling each chunk in
    place as soon as it lands (VPU work overlaps the in-flight DMAs).

    ids_ref : SMEM int32, per-tile block (blocked) or full array (fallback)
    emb_hbm : HBM   [vocab, dmp]   embedding table (manual row DMAs)
    o_ref   : VMEM  [tt, dmp]      output tile (DMA destination, scaled in place)
    sems    : DMA semaphores [n_slots], one per chunk slot
    """
    tile_rows = chunk * n_chunks
    base = 0 if ids_are_blocked else pl.program_id(0) * tile_rows

    def start_chunk(c):
        slot = c % n_slots
        row0 = c * chunk
        # All scalar id reads + descriptor pushes for this chunk happen before
        # any wait (keeps the scalar/misc slots busy, no sst->sld break).
        for i in range(chunk):
            tok = ids_ref[base + row0 + i]
            pltpu.make_async_copy(
                emb_hbm.at[pl.ds(tok, 1), :],
                o_ref.at[pl.ds(row0 + i, 1), :],
                sems.at[slot],
            ).start()

    def wait_chunk(c):
        slot = c % n_slots
        row0 = c * chunk
        for i in range(chunk):
            # Dummy src: wait() only needs the semaphore + per-copy byte count.
            pltpu.make_async_copy(
                emb_hbm.at[pl.ds(0, 1), :],
                o_ref.at[pl.ds(row0 + i, 1), :],
                sems.at[slot],
            ).wait()

    # Prime the window: chunks 0 .. n_slots-2 in flight.
    for c in range(min(n_slots - 1, n_chunks)):
        start_chunk(c)

    def step(c, carry):
        # Issue chunk c + n_slots - 1 first, then retire + scale chunk c.
        @pl.when(c + (n_slots - 1) < n_chunks)
        def _():
            start_chunk(c + (n_slots - 1))

        wait_chunk(c)
        row0 = pl.multiple_of(c * chunk, chunk)
        rows = o_ref[pl.ds(row0, chunk), :]
        o_ref[pl.ds(row0, chunk), :] = (
            rows.astype(jnp.float32) * scale).astype(o_ref.dtype)
        return carry

    lax.fori_loop(0, n_chunks, step, 0)


def _embedding_gather(ids_flat, emb_table, scale, *, tile_tokens=512,
                      chunk_rows=32, window_chunks=8):
    (total,) = ids_flat.shape
    vocab, d_model = emb_table.shape
    out_dtype = emb_table.dtype
    itemsize = jnp.dtype(out_dtype).itemsize

    # Lane-dense rows: pad the feature dim to a multiple of 128 so output
    # stores are unmasked and row DMAs are full-lane-width.
    dmp = _round_up(d_model, 128)
    table = emb_table
    if dmp != d_model:
        table = jnp.pad(emb_table, ((0, 0), (0, dmp - d_model)))
    row_bytes = dmp * itemsize

    # Generation-aware VMEM budget (v5e/v6e: 128 MiB, v7x: 64 MiB per core).
    vmem_cap = 64 << 20
    try:
        vmem_cap = int(getattr(pltpu.get_tpu_info(),
                               "vmem_capacity_bytes", vmem_cap))
    except Exception:
        pass
    budget = max(vmem_cap // 3, 8 << 20)   # for the 2x-buffered output tile

    chunk = max(8, _round_up(chunk_rows, 8))
    tt_cap = max(chunk, (budget // (2 * row_bytes)) // chunk * chunk)
    tt = min(_round_up(tile_tokens, chunk), tt_cap, _round_up(total, chunk))
    tt = max(tt, chunk)
    n_chunks = tt // chunk
    n_slots = max(1, min(window_chunks, n_chunks))

    num_tiles = pl.cdiv(total, tt)
    padded = num_tiles * tt
    if padded != total:
        # Pad ids with a valid in-range id (0): the extra row DMAs stay in
        # bounds; their rows are dropped by the masked partial last block.
        ids_flat = jnp.concatenate(
            [ids_flat, jnp.zeros((padded - total,), jnp.int32)])

    vmem_limit = int(min(vmem_cap, 128 << 20,
                         max(2 * tt * row_bytes + (4 << 20), 32 << 20)))
    cparams = pltpu.CompilerParams(dimension_semantics=("parallel",),
                                   vmem_limit_bytes=vmem_limit)
    out_shape = jax.ShapeDtypeStruct((total, dmp), out_dtype)

    try:
        # Preferred: ids delivered as per-tile SMEM blocks (caps SMEM use at
        # `tt` ids regardless of sequence length, pipelined with the grid).
        kernel = partial(_emb_gather_kernel, chunk=chunk, n_chunks=n_chunks,
                         n_slots=n_slots, scale=scale, ids_are_blocked=True)
        out = pl.pallas_call(
            kernel,
            out_shape=out_shape,
            grid=(num_tiles,),
            in_specs=[
                pl.BlockSpec((tt,), lambda i: (i,),
                             memory_space=pltpu.MemorySpace.SMEM),
                pl.BlockSpec(memory_space=pl.ANY),     # table stays in HBM
            ],
            out_specs=pl.BlockSpec((tt, dmp), lambda i: (i, 0)),
            scratch_shapes=[pltpu.SemaphoreType.DMA((n_slots,))],
            compiler_params=cparams,
        )(ids_flat, table)
    except Exception:
        # Fallback (previously validated config): whole ids array scalar-
        # prefetched into SMEM.
        kernel = partial(_emb_gather_kernel, chunk=chunk, n_chunks=n_chunks,
                         n_slots=n_slots, scale=scale, ids_are_blocked=False)
        out = pl.pallas_call(
            kernel,
            out_shape=out_shape,
            grid_spec=pltpu.PrefetchScalarGridSpec(
                num_scalar_prefetch=1,
                grid=(num_tiles,),
                in_specs=[pl.BlockSpec(memory_space=pl.ANY)],
                out_specs=pl.BlockSpec((tt, dmp), lambda i, ids: (i, 0)),
                scratch_shapes=[pltpu.SemaphoreType.DMA((n_slots,))],
            ),
            compiler_params=cparams,
        )(ids_flat, table)

    if dmp != d_model:
        out = out[:, :d_model]
    return out


# ---------------------------------------------------------------------------
# Public wrapper: EmbeddingScaled.forward
# ---------------------------------------------------------------------------
def embedding_scaled(ids, emb_table, *, path=None, tile_tokens=512,
                     chunk_rows=32, window_chunks=8):
    """
    ids:       jnp.ndarray int [B, n]   (token ids, 0 <= id < vocab)
    emb_table: jnp.ndarray     [vocab, d_model]
    returns:   jnp.ndarray     [B, n, d_model] = emb_table[ids] * sqrt(d_model)
    """
    B, n = ids.shape
    vocab, d_model = emb_table.shape
    scale = float(math.sqrt(d_model))
    total = B * n
    ids_flat = ids.reshape(total).astype(jnp.int32)
    itemsize = jnp.dtype(emb_table.dtype).itemsize

    if path is None:
        small = vocab <= 2048 and vocab * d_model * itemsize <= (4 << 20)
        path = "onehot" if small else "gather"

    if path == "onehot":
        out = _embedding_onehot(ids_flat, emb_table, scale)
    else:
        out = _embedding_gather(ids_flat, emb_table, scale,
                                tile_tokens=tile_tokens,
                                chunk_rows=chunk_rows,
                                window_chunks=window_chunks)
    return out.reshape(B, n, d_model)


if __name__ == "__main__":
    key = jax.random.PRNGKey(0)

    def check(vocab, d_model, B, n, path, key, atol, rtol):
        k_emb, k_ids, key = jax.random.split(key, 3)
        table = jax.random.normal(k_emb, (vocab, d_model), dtype=jnp.float32)
        ids = jax.random.randint(k_ids, (B, n), 0, vocab, dtype=jnp.int32)
        out = jax.block_until_ready(embedding_scaled(ids, table, path=path))
        ref = table[ids] * jnp.float32(math.sqrt(d_model))
        assert out.shape == (B, n, d_model), (out.shape, (B, n, d_model))
        assert jnp.allclose(out, ref, atol=atol, rtol=rtol), \
            f"mismatch vs reference (path={path})"
        return key

    # 1) Module's typical small config -> VMEM-resident table, one-hot MXU
    #    gather (looser tolerance covers any reduced-precision MXU pass).
    key = check(vocab=64, d_model=32, B=2, n=8, path=None, key=key,
                atol=3e-2, rtol=3e-2)
    # 2) HBM gather path: chunked multi-slot DMA window, DMA straight into the
    #    output tile, partial (masked) last output block.
    key = check(vocab=512, d_model=256, B=2, n=40, path="gather", key=key,
                atol=1e-5, rtol=1e-5)
    # 3) Gather path with d_model not a multiple of 128 (lane-padding branch).
    key = check(vocab=256, d_model=160, B=2, n=24, path="gather", key=key,
                atol=1e-5, rtol=1e-5)

    print("KERNEL_OK")
</pallas_src>

<mosaic_0001>
module attributes {stable_mosaic.version = 11 : i64} {
  func.func @_emb_onehot_kernel(%arg0: i32, %arg1: memref<16x1xi32, #tpu.memory_space<vmem>>, %arg2: memref<64x32xf32, #tpu.memory_space<vmem>>, %arg3: memref<16x32xf32, #tpu.memory_space<vmem>>) attributes {dimension_semantics = [#tpu.dimension_semantics<parallel>], iteration_bounds = array<i64: 1>, scalar_prefetch = 0 : i64, scratch_operands = 0 : i64, tpu.core_type = #tpu.core_type<tc>, window_params = [{transform_indices = @transform_0, window_bounds = array<i64: 16, 1>}, {pipeline_mode = #tpu.pipeline_mode<synchronous>, transform_indices = @transform_1, window_bounds = array<i64: 64, 32>}, {transform_indices = @transform_2, window_bounds = array<i64: 16, 32>}]} {
    %c0 = arith.constant 0 : index
    %c0_0 = arith.constant 0 : index
    %0 = vector.load %arg1[%c0, %c0_0] : memref<16x1xi32, #tpu.memory_space<vmem>>, vector<16x1xi32>
    %1 = tpu.iota {dimensions = array<i32: 1>} : vector<16x64xi32>
    %2 = vector.broadcast %0 : vector<16x1xi32> to vector<16x64xi32>
    %3 = arith.cmpi eq, %2, %1 : vector<16x64xi32>
    %4 = arith.extui %3 : vector<16x64xi1> to vector<16x64xi32>
    %5 = arith.sitofp %4 : vector<16x64xi32> to vector<16x64xf32>
    %c0_1 = arith.constant 0 : index
    %c0_2 = arith.constant 0 : index
    %6 = vector.load %arg2[%c0_1, %c0_2] : memref<64x32xf32, #tpu.memory_space<vmem>>, vector<64x32xf32>
    %cst = arith.constant dense<0.000000e+00> : vector<16x32xf32>
    %7 = tpu.matmul %5, %6, %cst {dimension_numbers = #tpu.dot_dimension_numbers<[1], [0], [0], [1], [0, 0, 1, 1], [], []>} : vector<16x64xf32>, vector<64x32xf32>, vector<16x32xf32> -> vector<16x32xf32>
    %cst_3 = arith.constant 5.65685415 : f32
    %8 = vector.broadcast %cst_3 : f32 to vector<16x32xf32>
    %9 = arith.mulf %7, %8 : vector<16x32xf32>
    %c0_4 = arith.constant 0 : index
    %c0_5 = arith.constant 0 : index
    %10 = vector.load %arg3[%c0_4, %c0_5] : memref<16x32xf32, #tpu.memory_space<vmem>>, vector<16x32xf32>
    tpu.vector_store %arg3[%c0_4, %c0_5], %9 {strides = array<i32>} : memref<16x32xf32, #tpu.memory_space<vmem>>, vector<16x32xf32>,
    return
  }
  func.func @transform_0(%arg0: i32) -> (i32, i32) {
    %c0_i32 = arith.constant 0 : i32
    %c0_i32_0 = arith.constant 0 : i32
    return %arg0, %c0_i32 : i32, i32
  }
  func.func @transform_1(%arg0: i32) -> (i32, i32) {
    %c0_i32 = arith.constant 0 : i32
    %c0_i32_0 = arith.constant 0 : i32
    %c0_i32_1 = arith.constant 0 : i32
    return %c0_i32, %c0_i32_0 : i32, i32
  }
  func.func @transform_2(%arg0: i32) -> (i32, i32) {
    %c0_i32 = arith.constant 0 : i32
    %c0_i32_0 = arith.constant 0 : i32
    return %arg0, %c0_i32 : i32, i32
  }
}

</mosaic_0001>

<bundles_post_ra>
// kernel: tpu_custom_call.1
= control target key start
LH: loop header
LB: loop body
LE: loop exit
PB: predicated region body
PF: predicated region fallthrough
CT: control target
= control target key end

     0   :  { %v218_v2 = vmov 0   ;;  %s280_s0 = inlined_call_operand.vmem [shape: s32[16,1], index: 0, kind: input, shape index: {}]   ;;  %s281_s1 = inlined_call_operand.vmem [shape: f32[64,32], index: 1, kind: input, shape index: {}]   ;;  %s282_s2 = inlined_call_operand.hbm [shape: f32[16,32], index: 2, kind: output, shape index: {}]  }
   0x1   :  { %v12_v0 = vld [vmem:[%s280_s0] sm:$0xff]  ;;  %193 = vset.pattern.permute.xlu0 %v218_v2  ;;  %v29_v3 = vld [vmem:[%s281_s1 + $0x8] sm:$0xff]  ;;  %v30_v4 = vld [vmem:[%s281_s1 + $0x10] sm:$0xff] }
   0x2   :  { %v28_v1 = vld [vmem:[%s281_s1] sm:$0xff]  ;;  %v31_v5 = vld [vmem:[%s281_s1 + $0x18] sm:$0xff]  ;;  %17 = vperm.xlu0 %193, %v12_v0   ;;  %v13_v6 = vld [vmem:[%s280_s0 + $0x8] sm:$0xff] }
   0x3   :  { %v172_v7 = vpack.c.bf16 %v29_v3, %v28_v1  ;;  %v176_v8 = vpack.c.bf16 %v31_v5, %v30_v4  ;;  %v32_v9 = vld [vmem:[%s281_s1 + $0x20] sm:$0xff]  ;;  %v33_v10 = vld [vmem:[%s281_s1 + $0x28] sm:$0xff] }
   0x4   :  { %7 = vsyncpa [#allocation3], 0  ;;  %v180_v11 = vpack.c.bf16 %v33_v10, %v32_v9  ;;  %v34_v12 = vld [vmem:[%s281_s1 + $0x30] sm:$0xff]  ;;  %v35_v13 = vld [vmem:[%s281_s1 + $0x38] sm:$0xff]  ;;  %v14_v15 = vlaneseq  ;;  %vm36_vm0 = vcmask 523264   ;;  %v219_v18 = vmov 0.0  }
   0x5   :  { %173 = vmatprep.subr.bf16.mxu0 %v172_v7  ;;  %v184_v14 = vpack.c.bf16 %v35_v13, %v34_v12  ;;  %s220_s28 = smov [#allocation2]   ;;  %vm120_vm3 = vcmask 261120  }
   0x6   :  { %175 = vmatpush3.bf16.msra.mxu0 %v172_v7  ;;  %20 = vperm.xlu0 %193, %v13_v6   ;;  %v15_v16 = vand.u32 127, %v14_v15  ;;  %s128_s1 = sshll.u32 %s220_s28, 4  ;;  %s129_s1 = int_to_ptr.vmem [resolvable:$true] %s128_s1 }
   0x7   :  { %177 = vmatprep.subr.bf16.mxu0 %v176_v8  ;;  %s194_s29 = scalar_lea.vmem %s129_s1, 256  ;;  %p199_p1 = scmp.lt.s32.totalorder %s129_s1, %s129_s1 }
   0x8   :  { %p195_p0 = scmp.ne.s32.totalorder %s129_s1, %s194_s29  ;;  %p200_p2 = scmp.lt.s32.totalorder %s194_s29, %s194_s29 }
   0xa   :  { %179 = vmatpush3.bf16.msra.mxu0 %v176_v8  ;;  %p201_p3 = por %p200_p2, %p199_p1 }
   0xb   :  { %181 = vmatprep.subr.bf16.mxu0 %v180_v11 }
   0xc   :  { %p202_p4 = pnand %p201_p3, %p195_p0 }
   0xe   :  { %183 = vmatpush3.bf16.msra.mxu0 %v180_v11 }
   0xf   :  { %185 = vmatprep.subr.bf16.mxu0 %v184_v14 }
  0x12   :  { %187 = vmatpush3.bf16.msra.mxu0 %v184_v14 }
  0x81   :  { %v18_v17 = vpop.permute.xlu0 %17 }
  0x82   :  { %vm22_vm1 = vcmp.eq.s32.totalorder %v18_v17, %v15_v16 }
  0x83   :  { %v139_v19 = vsel %vm22_vm1, 1.0, %v219_v18 }
  0x84   :  { %169 = vmatprep.mubr.msk.f32.mxu0 %vm36_vm0, %v139_v19 }
  0x85   :  { %v21_v20 = vpop.permute.xlu0 %20 }
  0x86   :  { %vm23_vm2 = vcmp.eq.s32.totalorder %v21_v20, %v15_v16 }
  0x87   :  { %v140_v21 = vsel %vm23_vm2, 1.0, %v219_v18 }
  0x88   :  { %170 = vmatmul.mubr.msk.f32.vlgmr.msra.gmra.mrb[0].mxu0 %vm36_vm0, %v140_v21 }
 0x15b   :  { %v171_v22 = vpop.f32.mrb[0].mxu0 }
 0x15c   :  { %v119_v23 = vmul.f32 5.656854, %v171_v22  ;;  %v109_v24 = vpop.f32.mrb[1].mxu0 }
 0x15d   :  { %v118_v25 = vmul.f32 5.656854, %v109_v24 }
 0x15e   :  { %122 = vst.msk [vmem:[#allocation2 + $0x8] sm:$0xff] %vm120_vm3, %v119_v23 }
 0x15f   :  { %121 = vst.msk [vmem:[#allocation2] sm:$0xff] %vm120_vm3, %v118_v25 }
 0x160   :  { %205 = shalt.err (!%p202_p4)
}
 0x161   :  { %s206_s4 = scalar_lea.hbm %s282_s2, 256 }
 0x162   :  { %p207_p5 = scmp.ne.s32.totalorder %s282_s2, %s206_s4  ;;  %p210_p6 = scmp.lt.u32.totalorder %s206_s4, %s282_s2 }
 0x164   :  { %p212_p7 = pnand %p210_p6, %p207_p5 }
 0x166   :  { %215 = shalt.err (!%p212_p7)
}
 0x167   :  { %s221_s9 = smov 128   ;;  %s222_s10 = smov 8  }
 0x168   :  { %134 = dma.vmem_to_hbm [thread:$0]  %s129_s1, 256, %s282_s2, [#allocation3], %s221_s9, %s221_s9, %s222_s10  }
 0x169   :  { %216 = dma.done.wait [#allocation3], 256  }
 0x16a   :  { %217 = vsyncadd [#allocation3], 4294967040 }
 0x16b   :  { %138 = vsyncpa [#allocation3], 1 }

</bundles_post_ra>
